<compile_context>
chip_gen: v6e
topology: v6e:2x2x1
jax: 0.10.0
libtpu: 0.0.40
codegen_flags: <defaults>
</compile_context>

<pallas_src>
import jax
import jax.numpy as jnp
from jax.experimental import pallas as pl
from jax.experimental.pallas import tpu as pltpu

HIDDEN = 512                     # fixed by the module (Linear(512, 512))
MAX_TM = 2048                    # row-tile cap: 4 MiB/f32 block, 16 MiB double-buffered
VMEM_LIMIT_BYTES = 40 * 1024 * 1024  # clears v5e's 16 MiB scoped default, < v7x's 64 MiB


def simplified_ln_kernel(x_ref, o_ref):
    # x_ref: (TM, 512) tile.  Output == x - sum(x, axis=-1, keepdims=True);
    # everything after the early `return x` (and the variance branch) is dead
    # code w.r.t. the returned value.
    x = x_ref[...]
    xf = x.astype(jnp.float32)  # bound once; no-op for f32 inputs
    # Three VPU adds over the four 128-lane chunks, then a single 128-lane
    # XLU reduction (instead of a full 512-lane reduce).
    partial = (xf[:, 0:128] + xf[:, 128:256]) + (xf[:, 256:384] + xf[:, 384:512])
    row_sum = jnp.sum(partial, axis=-1, keepdims=True)  # f32 accumulation
    # Subtract in the input dtype (bf16 VALU on v6e/v7x; identical for f32).
    o_ref[...] = x - row_sum.astype(x.dtype)


def _round_up(n, m):
    return ((n + m - 1) // m) * m


def _select_row_tile(M, dtype):
    """Pick the row tile: big, sublane-aligned, and an even step count for
    multi-step grids (balances v7x's two TensorCores)."""
    align = 16 if jnp.dtype(dtype).itemsize < 4 else 8  # bf16 needs (16,128) min tile
    tm = min(MAX_TM, _round_up(M, align))
    steps = pl.cdiv(M, tm)
    if steps > 1 and steps % 2 == 1:
        steps += 1
        tm = _round_up(-(-M // steps), align)
    return tm


def simplified_layernorm_forward(x):
    """x: (M, 512). Returns x - sum(x, axis=-1, keepdims=True) in x.dtype."""
    M, K = x.shape
    assert K == HIDDEN

    tm = _select_row_tile(M, x.dtype)
    grid = (pl.cdiv(M, tm),)  # row-wise op -> padded edge rows never affect valid outputs

    return pl.pallas_call(
        simplified_ln_kernel,
        out_shape=jax.ShapeDtypeStruct((M, HIDDEN), x.dtype),
        grid_spec=pltpu.PrefetchScalarGridSpec(
            num_scalar_prefetch=0,
            grid=grid,
            in_specs=[pl.BlockSpec((tm, HIDDEN), lambda i: (i, 0))],
            out_specs=pl.BlockSpec((tm, HIDDEN), lambda i: (i, 0)),
        ),
        compiler_params=pltpu.CompilerParams(
            dimension_semantics=("parallel",),
            vmem_limit_bytes=VMEM_LIMIT_BYTES,
        ),
    )(x)


if __name__ == "__main__":
    key = jax.random.PRNGKey(0)
    kx, kw, kb = jax.random.split(key, 3)

    # Small batch of tokens; hidden size fixed at 512 by the module.
    M = 8
    x = jax.random.normal(kx, (M, HIDDEN), dtype=jnp.float32)

    # Deterministic parameter init (shapes from __init__) — all dead code w.r.t.
    # the forward's returned value, kept only to mirror the module spec:
    ln_weight = jax.random.normal(kw, (HIDDEN,), dtype=jnp.float32)   # unused by forward
    ln_bias = jax.random.normal(kb, (HIDDEN,), dtype=jnp.float32)     # unused by forward
    eps_weight = jnp.eye(HIDDEN, dtype=jnp.float32)                   # unused by forward
    eps_bias = jnp.full((HIDDEN,), 1e-05, dtype=jnp.float32)          # unused by forward
    ones_w = jnp.ones((HIDDEN, HIDDEN), dtype=jnp.float32)            # unused by forward
    w_neg = -jnp.ones((HIDDEN, HIDDEN), dtype=jnp.float32)            # ones_linear_neg.weight

    out = jax.block_until_ready(simplified_layernorm_forward(x))
    # Reference: x + x @ (-ones)^T  ==  x - sum(x, axis=-1, keepdims=True)
    ref = x + x @ w_neg.T
    assert out.shape == (M, HIDDEN)
    assert jnp.allclose(out, ref, rtol=1e-5, atol=1e-4), "mismatch vs reference (f32 small)"

    # Ragged multi-step grid (exercises the even-step tile balancing path).
    M2 = 4100
    x2 = jax.random.normal(jax.random.PRNGKey(1), (M2, HIDDEN), dtype=jnp.float32)
    out2 = jax.block_until_ready(simplified_layernorm_forward(x2))
    ref2 = x2 - jnp.sum(x2, axis=-1, keepdims=True)
    assert jnp.allclose(out2, ref2, rtol=1e-5, atol=1e-4), "mismatch vs reference (ragged f32)"

    # bf16 streaming path (16-row alignment, f32 accumulation, bf16 subtract).
    M3 = 48
    x3 = jax.random.normal(jax.random.PRNGKey(2), (M3, HIDDEN), dtype=jnp.float32).astype(jnp.bfloat16)
    out3 = jax.block_until_ready(simplified_layernorm_forward(x3))
    ref3 = (x3 - jnp.sum(x3.astype(jnp.float32), axis=-1, keepdims=True).astype(jnp.bfloat16))
    assert out3.dtype == jnp.bfloat16
    assert jnp.allclose(out3.astype(jnp.float32), ref3.astype(jnp.float32),
                        rtol=1e-2, atol=1e-2), "mismatch vs reference (bf16)"

    print("KERNEL_OK")
</pallas_src>

<mosaic_0001>
module attributes {stable_mosaic.version = 11 : i64} {
  func.func @simplified_ln_kernel(%arg0: i32, %arg1: memref<8x512xf32, #tpu.memory_space<vmem>>, %arg2: memref<8x512xf32, #tpu.memory_space<vmem>>) attributes {dimension_semantics = [#tpu.dimension_semantics<parallel>], iteration_bounds = array<i64: 1>, scalar_prefetch = 0 : i64, scratch_operands = 0 : i64, tpu.core_type = #tpu.core_type<tc>, window_params = [{transform_indices = @transform_0, window_bounds = array<i64: 8, 512>}, {transform_indices = @transform_1, window_bounds = array<i64: 8, 512>}]} {
    %c0 = arith.constant 0 : index
    %c0_0 = arith.constant 0 : index
    %0 = vector.load %arg1[%c0, %c0_0] : memref<8x512xf32, #tpu.memory_space<vmem>>, vector<8x512xf32>
    %1 = vector.extract_strided_slice %0 {offsets = [0, 0], sizes = [8, 128], strides = [1, 1]} : vector<8x512xf32> to vector<8x128xf32>
    %2 = vector.extract_strided_slice %0 {offsets = [0, 128], sizes = [8, 128], strides = [1, 1]} : vector<8x512xf32> to vector<8x128xf32>
    %3 = arith.addf %1, %2 : vector<8x128xf32>
    %4 = vector.extract_strided_slice %0 {offsets = [0, 256], sizes = [8, 128], strides = [1, 1]} : vector<8x512xf32> to vector<8x128xf32>
    %5 = vector.extract_strided_slice %0 {offsets = [0, 384], sizes = [8, 128], strides = [1, 1]} : vector<8x512xf32> to vector<8x128xf32>
    %6 = arith.addf %4, %5 : vector<8x128xf32>
    %7 = arith.addf %3, %6 : vector<8x128xf32>
    %cst = arith.constant dense<0.000000e+00> : vector<8xf32>
    %8 = vector.multi_reduction <add>, %7, %cst [1] : vector<8x128xf32> to vector<8xf32>
    %9 = vector.shape_cast %8 : vector<8xf32> to vector<8x1xf32>
    %10 = vector.broadcast %9 : vector<8x1xf32> to vector<8x512xf32>
    %11 = arith.subf %0, %10 : vector<8x512xf32>
    %c0_1 = arith.constant 0 : index
    %c0_2 = arith.constant 0 : index
    %12 = vector.load %arg2[%c0_1, %c0_2] : memref<8x512xf32, #tpu.memory_space<vmem>>, vector<8x512xf32>
    tpu.vector_store %arg2[%c0_1, %c0_2], %11 {strides = array<i32>} : memref<8x512xf32, #tpu.memory_space<vmem>>, vector<8x512xf32>,
    return
  }
  func.func @transform_0(%arg0: i32) -> (i32, i32) {
    %c0_i32 = arith.constant 0 : i32
    %c0_i32_0 = arith.constant 0 : i32
    return %arg0, %c0_i32 : i32, i32
  }
  func.func @transform_1(%arg0: i32) -> (i32, i32) {
    %c0_i32 = arith.constant 0 : i32
    %c0_i32_0 = arith.constant 0 : i32
    return %arg0, %c0_i32 : i32, i32
  }
}

</mosaic_0001>

<bundles_post_ra>
// kernel: tpu_custom_call.1
= control target key start
LH: loop header
LB: loop body
LE: loop exit
PB: predicated region body
PF: predicated region fallthrough
CT: control target
= control target key end

     0   :  { %6 = vsyncpa [#allocation3], 0  ;;  %s117_s0 = inlined_call_operand.hbm [shape: f32[8,512], index: 0, kind: input, shape index: {}]   ;;  %s118_s1 = inlined_call_operand.hbm [shape: f32[8,512], index: 1, kind: output, shape index: {}]  }
   0x1   :  { %7 = vsyncpa [#allocation4], 0  ;;  %s99_s6 = smov [#allocation2]  }
   0x2   :  { %s14_s7 = sshll.u32 %s99_s6, 4  ;;  %s15_s7 = int_to_ptr.vmem [resolvable:$true] %s14_s7 }
   0x3   :  { %s63_s8 = scalar_lea.vmem %s15_s7, 512  ;;  %p68_p1 = scmp.lt.s32.totalorder %s15_s7, %s15_s7 }
   0x4   :  { %p64_p0 = scmp.ne.s32.totalorder %s15_s7, %s63_s8  ;;  %p69_p2 = scmp.lt.s32.totalorder %s63_s8, %s63_s8 }
   0x6   :  { %p70_p3 = por %p69_p2, %p68_p1 }
   0x8   :  { %p71_p4 = pnand %p70_p3, %p64_p0 }
   0xa   :  { %74 = shalt.err (!%p71_p4)
}
   0xb   :  { %17 = dma.hbm_to_vmem [thread:$0]  %s117_s0, 512, %s15_s7, [#allocation3]  }
   0xc   :  { %95 = dma.done.wait [#allocation3], 512  }
   0xd   :  { %96 = vsyncadd [#allocation3], 4294966784  ;;  %v21_v0 = vld [vmem:[#allocation2] sm:$0xff]  ;;  %v22_v1 = vld [vmem:[#allocation2 + $0x8] sm:$0xff]  ;;  %s100_s11 = smov [#allocation5]  }
   0xe   :  { %v23_v2 = vld [vmem:[#allocation2 + $0x10] sm:$0xff]  ;;  %v24_v3 = vld [vmem:[#allocation2 + $0x18] sm:$0xff]  ;;  %v25_v4 = vadd.f32 %v22_v1, %v21_v0  ;;  %s44_s12 = sshll.u32 %s100_s11, 4  ;;  %s45_s12 = int_to_ptr.vmem [resolvable:$true] %s44_s12 }
   0xf   :  { %v26_v5 = vadd.f32 %v24_v3, %v23_v2  ;;  %s75_s0 = scalar_lea.vmem %s45_s12, 512  ;;  %p80_p6 = scmp.lt.s32.totalorder %s45_s12, %s45_s12 }
  0x10   :  { %p76_p5 = scmp.ne.s32.totalorder %s45_s12, %s75_s0  ;;  %p81_p7 = scmp.lt.s32.totalorder %s75_s0, %s75_s0 }
  0x11   :  { %v27_v6 = vadd.f32 %v26_v5, %v25_v4 }
  0x12   :  { %p82_p8 = por %p81_p7, %p80_p6 }
  0x13   :  { %28 = vadd.xlane.f32.xlu0 %v27_v6 }
  0x14   :  { %p83_p9 = pnand %p82_p8, %p76_p5 }
  0x9c   :  { %v29_v7 = vpop.xlane.xlu0 %28 }
  0x9d   :  { %v30_v8 = vsub.f32 %v21_v0, %v29_v7  ;;  %v31_v9 = vsub.f32 %v22_v1, %v29_v7  ;;  %v32_v10 = vsub.f32 %v23_v2, %v29_v7  ;;  %v33_v11 = vsub.f32 %v24_v3, %v29_v7 }
  0x9f   :  { %34 = vst [vmem:[#allocation5] sm:$0xff] %v30_v8  ;;  %35 = vst [vmem:[#allocation5 + $0x8] sm:$0xff] %v31_v9 }
  0xa0   :  { %36 = vst [vmem:[#allocation5 + $0x10] sm:$0xff] %v32_v10  ;;  %37 = vst [vmem:[#allocation5 + $0x18] sm:$0xff] %v33_v11 }
  0xa1   :  { %86 = shalt.err (!%p83_p9)
}
  0xa2   :  { %47 = dma.vmem_to_hbm [thread:$0]  %s45_s12, 512, %s118_s1, [#allocation4]  }
  0xa3   :  { %97 = dma.done.wait [#allocation4], 512  }
  0xa4   :  { %98 = vsyncadd [#allocation4], 4294966784 }
  0xa5   :  { %51 = vsyncpa [#allocation3], 1 }
  0xa6   :  { %52 = vsyncpa [#allocation4], 1 }

</bundles_post_ra>
